<compile_context>
chip_gen: v7x
topology: tpu7x:2x2x1
jax: 0.10.0
libtpu: 0.0.40
codegen_flags: <defaults>
</compile_context>

<pallas_src>
import jax
import jax.numpy as jnp
from jax import lax
from jax.experimental import pallas as pl
from jax.experimental.pallas import tpu as pltpu

K = 7       # conv kernel size  (conv3x3 in this file is Conv1d(kernel_size=7))
P = 3       # conv padding
EPS = 1e-5  # BatchNorm eps (PyTorch default)


def _block_kernel(x_ref, keep_ref, w1_ref, b1_ref, w2_ref, b2_ref, out_ref):
    """One grid step: T batch segments collapsed onto the lane axis.

    x_ref    : (Cin,  T*Lseg) f32  -- each Lseg-lane segment holds one batch
               element laid out as [2P zeros | x (L) | 2P zeros | align zeros]
    keep_ref : (1,    T*Lseg) f32  -- 1.0 on per-segment positions [P, P+L), else 0.0
    w1_ref   : (Cmid, K*Cin)  mm   -- im2col conv1 weight, BN1 scale folded in
    b1_ref   : (Cmid, 1)      f32  -- BN1 shift
    w2_ref   : (Cout, K*Cmid) mm   -- im2col conv2 weight, BN2 scale folded in
    b2_ref   : (Cout, 1)      f32  -- BN2 shift
    out_ref  : (Cout, T*Lseg) f32  -- valid at per-segment positions [0, L)
    """
    xp = x_ref[...]                       # (Cin, TL) f32
    keep = keep_ref[...]                  # (1, TL)   f32
    w1 = w1_ref[...]
    w2 = w2_ref[...]
    mm = w1.dtype

    def shift(a, k):
        # out[:, t] = a[:, t + k] for t < TL - k, else 0 (tail positions are don't-care:
        # every value we need stays inside its own 128-aligned segment).
        if k == 0:
            return a
        tail = jnp.zeros((a.shape[0], k), a.dtype)
        return jnp.concatenate([a[:, k:], tail], axis=1)

    # Residual: the original sample value at length index i sits at segment
    # position 2P + i, so a 2P lane shift of the (f32!) input is the residual.
    res = shift(xp, 2 * P)                                            # f32

    # ---- conv1 (+ folded BN1 scale): one im2col matmul over the extended window ----
    xcol1 = jnp.concatenate([shift(xp, k).astype(mm) for k in range(K)], axis=0)
    h = jnp.dot(w1, xcol1, preferred_element_type=jnp.float32)        # (Cmid, TL)
    # BN1 shift + ReLU (dropout == identity in eval mode); mask the halo / alignment
    # positions to zero -- that masked halo IS conv2's zero padding.
    h = jnp.maximum(h + b1_ref[...], 0.0) * keep
    hm = h.astype(mm)

    # ---- conv2 (+ folded BN2 scale): one im2col matmul ----
    xcol2 = jnp.concatenate([shift(hm, k) for k in range(K)], axis=0)
    y = jnp.dot(w2, xcol2, preferred_element_type=jnp.float32)        # (Cout, TL)

    # BN2 shift + residual + ReLU, lane-dense store
    out_ref[...] = jnp.maximum(y + b2_ref[...] + res, 0.0).astype(out_ref.dtype)


def _pick_segments_per_step(n, cin, cout, lseg, mm_bytes, requested):
    """Segments (batch elements) per grid step, capped by a rough VMEM estimate
    and by the need to keep >= 2 grid steps for megacore / DMA overlap."""
    per_seg = lseg * (
        4 * cin * 4                 # x block, double buffered
        + 4 * cout * 4              # out block, double buffered
        + K * cin * (4 + mm_bytes)  # f32 shifted views + conv1 im2col
        + K * cout * mm_bytes       # conv2 im2col
        + 4 * cout * 4)             # h / masked h / y / slack
    budget = 20 * 1024 * 1024
    t = max(1, min(requested, n, budget // max(per_seg, 1)))
    if n >= 2:
        t = min(t, max(1, (n + 1) // 2))   # grid length >= 2
    return int(t)


def basic_block3x3(x, params, *, use_bf16=True, batch_block=8):
    """x: (N, C, L) float32 (PyTorch NCL).  Returns (N, C, L) float32."""
    n, cin, length = x.shape
    cout, w_cin, k = params["w1"].shape
    assert k == K and w_cin == cin
    cmid = cout
    assert cin == cout, (
        "residual add requires inplanes == planes (stride=1, no downsample)")

    # fold BN running stats into per-channel scale / shift (inference mode)
    def fold(g, b, m, v):
        scale = (g / jnp.sqrt(v + EPS)).astype(jnp.float32)
        shift = (b - m * scale).astype(jnp.float32)
        return scale, shift

    s1, sh1 = fold(params["bn1_g"], params["bn1_b"],
                   params["bn1_m"], params["bn1_v"])
    s2, sh2 = fold(params["bn2_g"], params["bn2_b"],
                   params["bn2_m"], params["bn2_v"])

    mm_dtype = jnp.bfloat16 if use_bf16 else jnp.float32
    mm_bytes = 2 if use_bf16 else 4

    # (Cout, Cin, K) -> (Cout, K, Cin) -> (Cout, K*Cin), BN scale folded in
    w1 = jnp.transpose(params["w1"], (0, 2, 1)).reshape(cmid, K * cin)
    w1 = (w1.astype(jnp.float32) * s1[:, None]).astype(mm_dtype)
    w2 = jnp.transpose(params["w2"], (0, 2, 1)).reshape(cout, K * cmid)
    w2 = (w2.astype(jnp.float32) * s2[:, None]).astype(mm_dtype)
    b1 = sh1.reshape(cmid, 1)
    b2 = sh2.reshape(cout, 1)

    # per-sample lane segment: [2P zeros | x | 2P zeros | zeros to 128 multiple]
    lseg = -(-(length + 4 * P) // 128) * 128
    t = _pick_segments_per_step(n, cin, cout, lseg, mm_bytes, batch_block)
    grid_n = -(-n // t)
    n_pad = grid_n * t
    tl = t * lseg

    x = x.astype(jnp.float32)
    xpad = jnp.pad(x, ((0, n_pad - n), (0, 0),
                       (2 * P, lseg - length - 2 * P)))         # (N_pad, Cin, Lseg)
    x2d = jnp.transpose(xpad, (1, 0, 2)).reshape(cin, n_pad * lseg)

    pos = jnp.arange(tl, dtype=jnp.int32) % lseg
    keep = ((pos >= P) & (pos < P + length)).astype(jnp.float32).reshape(1, tl)

    out2d = pl.pallas_call(
        _block_kernel,
        out_shape=jax.ShapeDtypeStruct((cout, n_pad * lseg), jnp.float32),
        grid_spec=pltpu.PrefetchScalarGridSpec(
            num_scalar_prefetch=0,
            grid=(grid_n,),
            in_specs=[
                pl.BlockSpec((cin, tl), lambda b: (0, b)),
                pl.BlockSpec((1, tl), lambda b: (0, 0)),
                pl.BlockSpec((cmid, K * cin), lambda b: (0, 0)),
                pl.BlockSpec((cmid, 1), lambda b: (0, 0)),
                pl.BlockSpec((cout, K * cmid), lambda b: (0, 0)),
                pl.BlockSpec((cout, 1), lambda b: (0, 0)),
            ],
            out_specs=pl.BlockSpec((cout, tl), lambda b: (0, b)),
        ),
        compiler_params=pltpu.CompilerParams(
            dimension_semantics=("parallel",),
            vmem_limit_bytes=32 * 1024 * 1024),
    )(x2d, keep, w1, b1, w2, b2)

    out = out2d.reshape(cout, n_pad, lseg)[:, :n, :length]      # (Cout, N, L)
    return jnp.transpose(out, (1, 0, 2))                        # (N, Cout, L)


def _reference(x, params):
    """Pure-JAX reference (eval-mode BN, identity dropout), f32."""
    def conv1d(inp, w):
        return lax.conv_general_dilated(
            inp, w, window_strides=(1,), padding=[(P, P)],
            dimension_numbers=("NCH", "OIH", "NCH"))

    def bn(inp, g, b, m, v):
        return (inp - m[None, :, None]) / jnp.sqrt(v[None, :, None] + EPS) \
               * g[None, :, None] + b[None, :, None]

    out = conv1d(x, params["w1"])
    out = bn(out, params["bn1_g"], params["bn1_b"],
             params["bn1_m"], params["bn1_v"])
    out = jnp.maximum(out, 0.0)
    out = conv1d(out, params["w2"])
    out = bn(out, params["bn2_g"], params["bn2_b"],
             params["bn2_m"], params["bn2_v"])
    return jnp.maximum(x + out, 0.0)


if __name__ == "__main__":
    # inplanes3 == planes (stride=1, downsample=None) so the residual add is valid.
    N, C, L = 2, 8, 32

    key = jax.random.PRNGKey(0)
    ks = jax.random.split(key, 11)

    params = {
        "w1":    0.1 * jax.random.normal(ks[0], (C, C, K), jnp.float32),
        "w2":    0.1 * jax.random.normal(ks[1], (C, C, K), jnp.float32),
        "bn1_g": 1.0 + 0.1 * jax.random.normal(ks[2], (C,), jnp.float32),
        "bn1_b": 0.1 * jax.random.normal(ks[3], (C,), jnp.float32),
        "bn1_m": 0.1 * jax.random.normal(ks[4], (C,), jnp.float32),
        "bn1_v": 0.5 + jax.random.uniform(ks[5], (C,), jnp.float32),
        "bn2_g": 1.0 + 0.1 * jax.random.normal(ks[6], (C,), jnp.float32),
        "bn2_b": 0.1 * jax.random.normal(ks[7], (C,), jnp.float32),
        "bn2_m": 0.1 * jax.random.normal(ks[8], (C,), jnp.float32),
        "bn2_v": 0.5 + jax.random.uniform(ks[9], (C,), jnp.float32),
    }
    x = jax.random.normal(ks[10], (N, C, L), jnp.float32)

    ref = _reference(x, params)

    # f32 matmul path: tight correctness check
    out_f32 = jax.block_until_ready(basic_block3x3(x, params, use_bf16=False))
    assert out_f32.shape == ref.shape == (N, C, L)
    assert jnp.allclose(out_f32, ref, atol=1e-4, rtol=1e-4), \
        f"f32 max err {jnp.max(jnp.abs(out_f32 - ref))}"

    # bf16-MXU / f32-accumulate path (v6e/v7x fast path): loose tolerance
    out_bf16 = jax.block_until_ready(basic_block3x3(x, params, use_bf16=True))
    assert out_bf16.shape == (N, C, L)
    assert jnp.allclose(out_bf16, ref, atol=5e-2, rtol=5e-2), \
        f"bf16 max err {jnp.max(jnp.abs(out_bf16 - ref))}"

    print("KERNEL_OK")
</pallas_src>

<mosaic_0001>
module attributes {stable_mosaic.version = 11 : i64} {
  func.func @_block_kernel(%arg0: i32, %arg1: memref<8x128xf32, #tpu.memory_space<vmem>>, %arg2: memref<1x128xf32, #tpu.memory_space<vmem>>, %arg3: memref<8x56xf32, #tpu.memory_space<vmem>>, %arg4: memref<8x1xf32, #tpu.memory_space<vmem>>, %arg5: memref<8x56xf32, #tpu.memory_space<vmem>>, %arg6: memref<8x1xf32, #tpu.memory_space<vmem>>, %arg7: memref<8x128xf32, #tpu.memory_space<vmem>>) attributes {dimension_semantics = [#tpu.dimension_semantics<parallel>], iteration_bounds = array<i64: 2>, scalar_prefetch = 0 : i64, scratch_operands = 0 : i64, tpu.core_type = #tpu.core_type<tc>, window_params = [{transform_indices = @transform_0, window_bounds = array<i64: 8, 128>}, {pipeline_mode = #tpu.pipeline_mode<synchronous>, transform_indices = @transform_1, window_bounds = array<i64: 1, 128>}, {pipeline_mode = #tpu.pipeline_mode<synchronous>, transform_indices = @transform_2, window_bounds = array<i64: 8, 56>}, {pipeline_mode = #tpu.pipeline_mode<synchronous>, transform_indices = @transform_3, window_bounds = array<i64: 8, 1>}, {pipeline_mode = #tpu.pipeline_mode<synchronous>, transform_indices = @transform_4, window_bounds = array<i64: 8, 56>}, {pipeline_mode = #tpu.pipeline_mode<synchronous>, transform_indices = @transform_5, window_bounds = array<i64: 8, 1>}, {transform_indices = @transform_6, window_bounds = array<i64: 8, 128>}]} {
    %c0 = arith.constant 0 : index
    %c0_0 = arith.constant 0 : index
    %0 = vector.load %arg1[%c0, %c0_0] : memref<8x128xf32, #tpu.memory_space<vmem>>, vector<8x128xf32>
    %c0_1 = arith.constant 0 : index
    %c0_2 = arith.constant 0 : index
    %1 = vector.load %arg2[%c0_1, %c0_2] : memref<1x128xf32, #tpu.memory_space<vmem>>, vector<1x128xf32>
    %c0_3 = arith.constant 0 : index
    %c0_4 = arith.constant 0 : index
    %2 = vector.load %arg3[%c0_3, %c0_4] : memref<8x56xf32, #tpu.memory_space<vmem>>, vector<8x56xf32>
    %c0_5 = arith.constant 0 : index
    %c0_6 = arith.constant 0 : index
    %3 = vector.load %arg5[%c0_5, %c0_6] : memref<8x56xf32, #tpu.memory_space<vmem>>, vector<8x56xf32>
    %cst = arith.constant 0.000000e+00 : f32
    %4 = vector.broadcast %cst : f32 to vector<8x6xf32>
    %5 = vector.extract_strided_slice %0 {offsets = [0, 6], sizes = [8, 122], strides = [1, 1]} : vector<8x128xf32> to vector<8x122xf32>
    %6 = tpu.concatenate %5, %4 in 1 : vector<8x122xf32>, vector<8x6xf32> -> vector<8x128xf32>
    %cst_7 = arith.constant 0.000000e+00 : f32
    %7 = vector.broadcast %cst_7 : f32 to vector<8x1xf32>
    %8 = vector.extract_strided_slice %0 {offsets = [0, 1], sizes = [8, 127], strides = [1, 1]} : vector<8x128xf32> to vector<8x127xf32>
    %9 = tpu.concatenate %8, %7 in 1 : vector<8x127xf32>, vector<8x1xf32> -> vector<8x128xf32>
    %cst_8 = arith.constant 0.000000e+00 : f32
    %10 = vector.broadcast %cst_8 : f32 to vector<8x2xf32>
    %11 = vector.extract_strided_slice %0 {offsets = [0, 2], sizes = [8, 126], strides = [1, 1]} : vector<8x128xf32> to vector<8x126xf32>
    %12 = tpu.concatenate %11, %10 in 1 : vector<8x126xf32>, vector<8x2xf32> -> vector<8x128xf32>
    %cst_9 = arith.constant 0.000000e+00 : f32
    %13 = vector.broadcast %cst_9 : f32 to vector<8x3xf32>
    %14 = vector.extract_strided_slice %0 {offsets = [0, 3], sizes = [8, 125], strides = [1, 1]} : vector<8x128xf32> to vector<8x125xf32>
    %15 = tpu.concatenate %14, %13 in 1 : vector<8x125xf32>, vector<8x3xf32> -> vector<8x128xf32>
    %cst_10 = arith.constant 0.000000e+00 : f32
    %16 = vector.broadcast %cst_10 : f32 to vector<8x4xf32>
    %17 = vector.extract_strided_slice %0 {offsets = [0, 4], sizes = [8, 124], strides = [1, 1]} : vector<8x128xf32> to vector<8x124xf32>
    %18 = tpu.concatenate %17, %16 in 1 : vector<8x124xf32>, vector<8x4xf32> -> vector<8x128xf32>
    %cst_11 = arith.constant 0.000000e+00 : f32
    %19 = vector.broadcast %cst_11 : f32 to vector<8x5xf32>
    %20 = vector.extract_strided_slice %0 {offsets = [0, 5], sizes = [8, 123], strides = [1, 1]} : vector<8x128xf32> to vector<8x123xf32>
    %21 = tpu.concatenate %20, %19 in 1 : vector<8x123xf32>, vector<8x5xf32> -> vector<8x128xf32>
    %cst_12 = arith.constant 0.000000e+00 : f32
    %22 = vector.broadcast %cst_12 : f32 to vector<8x6xf32>
    %23 = vector.extract_strided_slice %0 {offsets = [0, 6], sizes = [8, 122], strides = [1, 1]} : vector<8x128xf32> to vector<8x122xf32>
    %24 = tpu.concatenate %23, %22 in 1 : vector<8x122xf32>, vector<8x6xf32> -> vector<8x128xf32>
    %25 = tpu.concatenate %0, %9, %12, %15, %18, %21, %24 in 0 : vector<8x128xf32>, vector<8x128xf32>, vector<8x128xf32>, vector<8x128xf32>, vector<8x128xf32>, vector<8x128xf32>, vector<8x128xf32> -> vector<56x128xf32>
    %cst_13 = arith.constant dense<0.000000e+00> : vector<8x128xf32>
    %26 = tpu.matmul %2, %25, %cst_13 {dimension_numbers = #tpu.dot_dimension_numbers<[1], [0], [0], [1], [0, 0, 1, 1], [], []>} : vector<8x56xf32>, vector<56x128xf32>, vector<8x128xf32> -> vector<8x128xf32>
    %c0_14 = arith.constant 0 : index
    %c0_15 = arith.constant 0 : index
    %27 = vector.load %arg4[%c0_14, %c0_15] : memref<8x1xf32, #tpu.memory_space<vmem>>, vector<8x1xf32>
    %28 = vector.broadcast %27 : vector<8x1xf32> to vector<8x128xf32>
    %29 = arith.addf %26, %28 : vector<8x128xf32>
    %cst_16 = arith.constant 0.000000e+00 : f32
    %30 = vector.broadcast %cst_16 : f32 to vector<8x128xf32>
    %31 = arith.maximumf %29, %30 : vector<8x128xf32>
    %32 = vector.broadcast %1 : vector<1x128xf32> to vector<8x128xf32>
    %33 = arith.mulf %31, %32 : vector<8x128xf32>
    %cst_17 = arith.constant 0.000000e+00 : f32
    %34 = vector.broadcast %cst_17 : f32 to vector<8x1xf32>
    %35 = vector.extract_strided_slice %33 {offsets = [0, 1], sizes = [8, 127], strides = [1, 1]} : vector<8x128xf32> to vector<8x127xf32>
    %36 = tpu.concatenate %35, %34 in 1 : vector<8x127xf32>, vector<8x1xf32> -> vector<8x128xf32>
    %cst_18 = arith.constant 0.000000e+00 : f32
    %37 = vector.broadcast %cst_18 : f32 to vector<8x2xf32>
    %38 = vector.extract_strided_slice %33 {offsets = [0, 2], sizes = [8, 126], strides = [1, 1]} : vector<8x128xf32> to vector<8x126xf32>
    %39 = tpu.concatenate %38, %37 in 1 : vector<8x126xf32>, vector<8x2xf32> -> vector<8x128xf32>
    %cst_19 = arith.constant 0.000000e+00 : f32
    %40 = vector.broadcast %cst_19 : f32 to vector<8x3xf32>
    %41 = vector.extract_strided_slice %33 {offsets = [0, 3], sizes = [8, 125], strides = [1, 1]} : vector<8x128xf32> to vector<8x125xf32>
    %42 = tpu.concatenate %41, %40 in 1 : vector<8x125xf32>, vector<8x3xf32> -> vector<8x128xf32>
    %cst_20 = arith.constant 0.000000e+00 : f32
    %43 = vector.broadcast %cst_20 : f32 to vector<8x4xf32>
    %44 = vector.extract_strided_slice %33 {offsets = [0, 4], sizes = [8, 124], strides = [1, 1]} : vector<8x128xf32> to vector<8x124xf32>
    %45 = tpu.concatenate %44, %43 in 1 : vector<8x124xf32>, vector<8x4xf32> -> vector<8x128xf32>
    %cst_21 = arith.constant 0.000000e+00 : f32
    %46 = vector.broadcast %cst_21 : f32 to vector<8x5xf32>
    %47 = vector.extract_strided_slice %33 {offsets = [0, 5], sizes = [8, 123], strides = [1, 1]} : vector<8x128xf32> to vector<8x123xf32>
    %48 = tpu.concatenate %47, %46 in 1 : vector<8x123xf32>, vector<8x5xf32> -> vector<8x128xf32>
    %cst_22 = arith.constant 0.000000e+00 : f32
    %49 = vector.broadcast %cst_22 : f32 to vector<8x6xf32>
    %50 = vector.extract_strided_slice %33 {offsets = [0, 6], sizes = [8, 122], strides = [1, 1]} : vector<8x128xf32> to vector<8x122xf32>
    %51 = tpu.concatenate %50, %49 in 1 : vector<8x122xf32>, vector<8x6xf32> -> vector<8x128xf32>
    %52 = tpu.concatenate %33, %36, %39, %42, %45, %48, %51 in 0 : vector<8x128xf32>, vector<8x128xf32>, vector<8x128xf32>, vector<8x128xf32>, vector<8x128xf32>, vector<8x128xf32>, vector<8x128xf32> -> vector<56x128xf32>
    %cst_23 = arith.constant dense<0.000000e+00> : vector<8x128xf32>
    %53 = tpu.matmul %3, %52, %cst_23 {dimension_numbers = #tpu.dot_dimension_numbers<[1], [0], [0], [1], [0, 0, 1, 1], [], []>} : vector<8x56xf32>, vector<56x128xf32>, vector<8x128xf32> -> vector<8x128xf32>
    %c0_24 = arith.constant 0 : index
    %c0_25 = arith.constant 0 : index
    %54 = vector.load %arg6[%c0_24, %c0_25] : memref<8x1xf32, #tpu.memory_space<vmem>>, vector<8x1xf32>
    %55 = vector.broadcast %54 : vector<8x1xf32> to vector<8x128xf32>
    %56 = arith.addf %53, %55 : vector<8x128xf32>
    %57 = arith.addf %56, %6 : vector<8x128xf32>
    %cst_26 = arith.constant 0.000000e+00 : f32
    %58 = vector.broadcast %cst_26 : f32 to vector<8x128xf32>
    %59 = arith.maximumf %57, %58 : vector<8x128xf32>
    %c0_27 = arith.constant 0 : index
    %c0_28 = arith.constant 0 : index
    %60 = vector.load %arg7[%c0_27, %c0_28] : memref<8x128xf32, #tpu.memory_space<vmem>>, vector<8x128xf32>
    tpu.vector_store %arg7[%c0_27, %c0_28], %59 {strides = array<i32>} : memref<8x128xf32, #tpu.memory_space<vmem>>, vector<8x128xf32>,
    return
  }
  func.func @transform_0(%arg0: i32) -> (i32, i32) {
    %c0_i32 = arith.constant 0 : i32
    %c0_i32_0 = arith.constant 0 : i32
    return %c0_i32, %arg0 : i32, i32
  }
  func.func @transform_1(%arg0: i32) -> (i32, i32) {
    %c0_i32 = arith.constant 0 : i32
    %c0_i32_0 = arith.constant 0 : i32
    %c0_i32_1 = arith.constant 0 : i32
    return %c0_i32, %c0_i32_0 : i32, i32
  }
  func.func @transform_2(%arg0: i32) -> (i32, i32) {
    %c0_i32 = arith.constant 0 : i32
    %c0_i32_0 = arith.constant 0 : i32
    %c0_i32_1 = arith.constant 0 : i32
    return %c0_i32, %c0_i32_0 : i32, i32
  }
  func.func @transform_3(%arg0: i32) -> (i32, i32) {
    %c0_i32 = arith.constant 0 : i32
    %c0_i32_0 = arith.constant 0 : i32
    %c0_i32_1 = arith.constant 0 : i32
    return %c0_i32, %c0_i32_0 : i32, i32
  }
  func.func @transform_4(%arg0: i32) -> (i32, i32) {
    %c0_i32 = arith.constant 0 : i32
    %c0_i32_0 = arith.constant 0 : i32
    %c0_i32_1 = arith.constant 0 : i32
    return %c0_i32, %c0_i32_0 : i32, i32
  }
  func.func @transform_5(%arg0: i32) -> (i32, i32) {
    %c0_i32 = arith.constant 0 : i32
    %c0_i32_0 = arith.constant 0 : i32
    %c0_i32_1 = arith.constant 0 : i32
    return %c0_i32, %c0_i32_0 : i32, i32
  }
  func.func @transform_6(%arg0: i32) -> (i32, i32) {
    %c0_i32 = arith.constant 0 : i32
    %c0_i32_0 = arith.constant 0 : i32
    return %c0_i32, %arg0 : i32, i32
  }
}

</mosaic_0001>

<bundles_post_ra>
// kernel: tpu_custom_call.1
= control target key start
LH: loop header
LB: loop body
LE: loop exit
PB: predicated region body
PF: predicated region fallthrough
CT: control target
= control target key end

     0   :  { %11 = vsyncpa [#allocation3], 0  ;;  %s977_s0 = inlined_call_operand.vmem [shape: f32[8,256], index: 0, kind: input, shape index: {}]   ;;  %s978_s1 = inlined_call_operand.vmem [shape: f32[1,128], index: 1, kind: input, shape index: {}]   ;;  %s979_s2 = inlined_call_operand.vmem [shape: f32[8,56], index: 2, kind: input, shape index: {}]   ;;  %s980_s3 = inlined_call_operand.vmem [shape: f32[8,1], index: 3, kind: input, shape index: {}]   ;;  %s981_s4 = inlined_call_operand.vmem [shape: f32[8,56], index: 4, kind: input, shape index: {}]   ;;  %s982_s5 = inlined_call_operand.vmem [shape: f32[8,1], index: 5, kind: input, shape index: {}]   ;;  %s983_s6 = inlined_call_operand.hbm [shape: f32[8,256], index: 6, kind: output, shape index: {}]  }
   0x1   :  { %13 = vsyncpa [#allocation3 + $0x1], 0  ;;  %s811_s21 = smov 0   ;;  %s813_s22 = smov 0  }
   0x2   :  { %s815_s23 = smov 0   ;;  %s817_s24 = smov 0  }
   0x3 LB: > { %s832_s25 = sadd.s32 4294967295, %s762_s24   ;;  %s550_s26 = sadd.s32 4294967294, %s762_s24   ;;  %s762_s24 = sphi %s817_s24, %s995_s24   ;;  %s758_s23 = sphi %s815_s23, %s994_s23   ;;  %s754_s22 = sphi %s813_s22, %s993_s22   ;;  %s750_s21 = sphi %s811_s21, %s992_s21  }
   0x4   : > { %s836_s27 = sadd.s32 1, %s762_s24   ;;  %s157_s28 = sadd.s32 1, %s758_s23 }
   0x5   : > { %s154_s29 = ssub.s32 %s762_s24, %s836_s27  ;;  %p167_p0 = scmp.ne.s32.totalorder %s758_s23, %s754_s22 }
   0x6   : > { %p155_p1 = scmp.eq.s32.totalorder %s154_s29, 0  ;;  %p168_p2 = scmp.eq.s32.totalorder %s832_s25, 1 }
   0x7   : > { %p173_p3 = scmp.ne.s32.totalorder %s754_s22, %s750_s21  ;;  %p174_p4 = scmp.eq.s32.totalorder %s550_s26, 1 }
   0x8   : > { %s847_s30 = scalar_select %p155_p1, %s758_s23, %s157_s28  }
   0x9   : > { %p849_p5 = por %p168_p2, %p167_p0  ;;  %p853_p6 = por %p174_p4, %p173_p3 }
   0xa   : > { %p553_p7 = scmp.ge.s32.totalorder %s762_s24, 1  ;;  %p214_p8 = scmp.lt.s32.totalorder %s762_s24, 3 }
   0xc   : > { %p215_p9 = pnand %p553_p7, %p214_p8 }
   0xd   : > { %p243_p10 = scmp.lt.s32.totalorder (!%p215_p9), %s832_s25, 1  ;;  %v764_v0 = vmov (!%p215_p9), 0.0|0.0   ;;  %s765_s14 = smov (!%p215_p9), 127   ;;  %vm767_vm0 = vmmov (!%p215_p9), 0   ;;  %v768_v2 = vmov (!%p215_p9), 0.0   ;;  %v769_v3 = vmov (!%p215_p9), 0  }
   0xe   : > { %218 = sbr.rel (%p215_p9) target bundleno = 736 (0x2e0), region = 44  ;;  %625 = vmatprep.subr.bf16.mxu0 (!%p215_p9), %v764_v0  ;;  %637 = vmatprep.subr.bf16.mxu1 (!%p215_p9), %v764_v0  ;;  %s766_s15 = smov (!%p215_p9), 125   ;;  %v282_v4 = vld [vmem:[%s980_s3] sm:$0xff] (!%p215_p9)  ;;  %vm260_vm1 = vcmask (!%p215_p9), 1039360   ;;  %vm774_vm2 = vmmov (!%p215_p9), 1   ;;  %vm265_vm4 = vcmask (!%p215_p9), 1031168  }
   0xf   : > { %605 = vmatprep.mubr.msk.f32.mxu0 (!%p215_p9), %vm767_vm0, %v768_v2  ;;  %622 = vmatprep.mubr.msk.f32.mxu1 (!%p215_p9), %vm767_vm0, %v768_v2  ;;  %s770_s16 = smov (!%p215_p9), 126   ;;  %s771_s17 = smov (!%p215_p9), 124   ;;  %vm877_vm3 = vmpackc.low (!%p215_p9), %vm260_vm1, %vm774_vm2  ;;  %vm270_vm5 = vcmask (!%p215_p9), 1022976   ;;  %vm275_vm7 = vcmask (!%p215_p9), 1014784   ;;  %vm280_vm8 = vcmask (!%p215_p9), 1006592   ;;  %vm255_vm10 = vcmask (!%p215_p9), 998400  }
  0x10   : > { %699 = vset.pattern.permute.xlu0 (!%p215_p9), %v769_v3  ;;  %s772_s18 = smov (!%p215_p9), 123   ;;  %s773_s19 = smov (!%p215_p9), 122   ;;  %vm884_vm6 = vmpackc.low (!%p215_p9), %vm270_vm5, %vm265_vm4  ;;  %v249_v17 = vld [vmem:[%s979_s2] sm:$0xff] (!%p215_p9)  ;;  %vm288_vm11 = vcmask (!%p215_p9), 457728  }
  0x11   : > { %vm891_vm9 = vmpackc.low (!%p215_p9), %vm280_vm8, %vm275_vm7  ;;  %v563_v22 = vld [vmem:[%s978_s1] ss:$0 sm:$0xff] (!%p215_p9) }
  0x12   : > { %v395_v25 = vld [vmem:[%s982_s5] sm:$0xff] (!%p215_p9) }
  0x13   : > { %v250_v34 = vld [vmem:[%s981_s4] sm:$0xff] (!%p215_p9) }
  0x15   : > { %s244_s9 = scalar_select %p243_p10, %s832_s25, 1 }
  0x17   : > { %s555_s10 = sshll.u32 %s244_s9, 3 }
  0x18   : > { %s246_s13 = scalar_lea.vmem %s977_s0, %s555_s10 }
  0x19   : > { %v247_v1 = vld [vmem:[%s246_s13] sm:$0xff] }
  0x1a   : > { %257 = vrot.lane.b32.xlu0 %v247_v1, %s765_s14  ;;  %267 = vrot.lane.b32.xlu1 %v247_v1, %s766_s15 }
  0x1e   : > { %262 = vrot.lane.b32.xlu0 %v247_v1, %s770_s16  ;;  %272 = vrot.lane.b32.xlu1 %v247_v1, %s771_s17 }
  0x22   : > { %277 = vrot.lane.b32.xlu0 %v247_v1, %s772_s18  ;;  %252 = vrot.lane.b32.xlu1 %v247_v1, %s773_s19 }
  0x26   : > { %285 = vperm.xlu0 %699, %v282_v4  }
  0x8c   : > { %v258_v5 = vpop.permute.xlu0 %257  ;;  %v268_v7 = vpop.permute.xlu1 %267 }
  0x8d   : > { %v626_v8 = vpack.c.bf16 %v258_v5, %v247_v1 }
  0x8f   : > { %628 = vmatpush3.bf16.msk.msra.mxu0 %vm877_vm3, %v626_v8 }
  0x90   : > { %v263_v9 = vpop.permute.xlu0 %262  ;;  %629 = vmatprep.subr.bf16.mxu0 %v764_v0  ;;  %v273_v12 = vpop.permute.xlu1 %272 }
  0x91   : > { %v630_v11 = vpack.c.bf16 %v268_v7, %v263_v9 }
  0x93   : > { %632 = vmatpush3.bf16.msk.msra.mxu0 %vm884_vm6, %v630_v11 }
  0x94   : > { %v278_v13 = vpop.permute.xlu0 %277  ;;  %633 = vmatprep.subr.bf16.mxu0 %v764_v0  ;;  %v253_v16 = vpop.permute.xlu1 %252 }
  0x95   : > { %v634_v15 = vpack.c.bf16 %v278_v13, %v273_v12  ;;  %v256_v40 = vsel %vm255_vm10, %v253_v16, 0.0 }
  0x97   : > { %636 = vmatpush3.bf16.msk.msra.mxu0 %vm891_vm9, %v634_v15 }
  0x98   : > { %603 = vmatprep.subr.mxu0 %v768_v2 }
  0x9b   : > { %604 = vmatpush3.msk.msra.mxu0 %vm255_vm10, %v253_v16 }
  0x9c   : > { %606 = vmatmul.mubr.msk.f32.vlgmr.msra.gmra.mrb[0].mxu0 %vm288_vm11, %v249_v17 }
  0xa5   : > { %v286_v18 = vpop.permute.xlu0 %285 }
 0x16f   : > { %v358_v19 = vpop.f32.mrb[0].mxu0 }
 0x170   : > { %v359_v20 = vadd.f32 %v358_v19, %v286_v18  ;;  %v607_v21 = vpop.f32.mrb[1].mxu0 }
 0x172   : > { %v362_v23 = vmax.f32 %v359_v20, 0.0 }
 0x174   : > { %v369_v24 = vmul.f32 %v563_v22, %v362_v23 }
 0x176   : > { %379 = vrot.lane.b32.xlu0 %v369_v24, %s766_s15  ;;  %371 = vrot.lane.b32.xlu1 %v369_v24, %s765_s14  ;;  %s240_s15 = sand.u32 1, %s754_s22  }
 0x177   : > { %s478_s29 = scalar_lea.sflag [#allocation3], %s240_s15 }
 0x17a   : > { %387 = vrot.lane.b32.xlu0 %v369_v24, %s772_s18  ;;  %375 = vrot.lane.b32.xlu1 %v369_v24, %s770_s16  ;;  %s554_s16 = sshll.u32 %s240_s15, 3 }
 0x17b   : > { %s242_s18 = scalar_lea.vmem [#allocation2], %s554_s16 }
 0x17e   : > { %398 = vperm.xlu0 %699, %v395_v25   ;;  %383 = vrot.lane.b32.xlu1 %v369_v24, %s771_s17  ;;  %s572_s17 = sshll.u32 %s832_s25, 7  ;;  %s775_s25 = smov [#allocation2]  }
 0x17f   : > { %s935_s28 = scalar_lea.hbm %s983_s6, %s572_s17  ;;  %s704_s10 = sshll.u32 %s775_s25, 4  ;;  %s705_s10 = int_to_ptr.vmem [resolvable:$false] %s704_s10 }
 0x180   : > { %s706_s11 = scalar_lea.vmem %s705_s10, 256 }
 0x182   : > { %391 = vrot.lane.b32.xlu1 %v369_v24, %s773_s19  ;;  %s491_s19 = sshll.u32 %s242_s18, 4  ;;  %s937_s19 = int_to_ptr.vmem [resolvable:$true] %s491_s19 }
 0x183   : > { %s700_s9 = scalar_lea.vmem %s937_s19, 128  ;;  %p707_p0 = scmp.lt.s32.totalorder %s937_s19, %s705_s10 }
 0x184   : > { %p701_p11 = scmp.ne.s32.totalorder %s937_s19, %s700_s9  ;;  %p708_p1 = scmp.lt.s32.totalorder %s706_s11, %s700_s9 }
 0x186   : > { %p702_p12 = pnand %p701_p11, %p849_p5  ;;  %p709_p2 = por %p708_p1, %p707_p0 }
 0x188   : > { %p703_p13 = pneg %p702_p12 }
 0x18a   : > { %p710_p3 = pnand %p709_p2, %p703_p13 }
 0x1e8   : > { %v372_v26 = vpop.permute.xlu1 %371  ;;  %v380_v28 = vpop.permute.xlu0 %379 }
 0x1e9   : > { %v638_v27 = vpack.c.bf16 %v372_v26, %v369_v24 }
 0x1eb   : > { %640 = vmatpush3.bf16.msk.msra.mxu1 %vm877_vm3, %v638_v27 }
 0x1ec   : > { %v376_v29 = vpop.permute.xlu1 %375  ;;  %641 = vmatprep.subr.bf16.mxu1 %v764_v0  ;;  %v388_v31 = vpop.permute.xlu0 %387 }
 0x1ed   : > { %v642_v30 = vpack.c.bf16 %v380_v28, %v376_v29 }
 0x1ef   : > { %644 = vmatpush3.bf16.msk.msra.mxu1 %vm884_vm6, %v642_v30 }
 0x1f0   : > { %v384_v32 = vpop.permute.xlu1 %383  ;;  %645 = vmatprep.subr.bf16.mxu1 %v764_v0 }
 0x1f1   : > { %v646_v33 = vpack.c.bf16 %v388_v31, %v384_v32 }
 0x1f3   : > { %648 = vmatpush3.bf16.msk.msra.mxu1 %vm891_vm9, %v646_v33 }
 0x1f4   : > { %620 = vmatprep.subr.mxu1 %v768_v2  ;;  %v392_v35 = vpop.permute.xlu1 %391 }
 0x1f7   : > { %621 = vmatpush3.msk.msra.mxu1 %vm255_vm10, %v392_v35 }
 0x1f8   : > { %623 = vmatmul.mubr.msk.f32.vlgmr.msra.gmra.mrb[0].mxu1 %vm288_vm11, %v250_v34 }
 0x1fd   : > { %v399_v36 = vpop.permute.xlu0 %398 }
 0x2cb   : > { %v470_v37 = vpop.f32.mrb[0].mxu1 }
 0x2cc   : > { %v471_v38 = vadd.f32 %v470_v37, %v399_v36  ;;  %v624_v39 = vpop.f32.mrb[1].mxu1 }
 0x2ce   : > { %v474_v41 = vadd.f32 %v471_v38, %v256_v40 }
 0x2d0   : > { %v475_v42 = vmax.f32 %v474_v41, 0.0 }
 0x2d2   : > { %476 = vst [vmem:[%s242_s18] sm:$0xff] %v475_v42 }
 0x2d3   : > { %713 = shalt.err (!%p710_p3)
}
 0x2d4   : > { %s714_s12 = scalar_lea.hbm %s935_s28, 128  ;;  %s718_s15 = scalar_lea.hbm %s983_s6, 256 }
 0x2d5   : > { %p715_p4 = scmp.ne.s32.totalorder %s935_s28, %s714_s12  ;;  %p719_p9 = scmp.lt.u32.totalorder %s935_s28, %s983_s6 }
 0x2d6   : > { %p720_p10 = scmp.lt.u32.totalorder %s718_s15, %s714_s12  ;;  %p722_p12 = scmp.lt.u32.totalorder %s714_s12, %s935_s28 }
 0x2d7   : > { %p716_p7 = pnand %p715_p4, %p849_p5 }
 0x2d8   : > { %p721_p11 = por %p720_p10, %p719_p9 }
 0x2d9   : > { %p717_p8 = pneg %p716_p7 }
 0x2da   : > { %p723_p13 = por %p722_p12, %p721_p11 }
 0x2dc   : > { %p724_p0 = pnand %p723_p13, %p717_p8 }
 0x2de   : > { %727 = shalt.err (!%p724_p0)
}
 0x2df   : > { %649 = dma.vmem_to_hbm [thread:$0]  (%p849_p5), %s937_s19, 128, %s935_s28, %s478_s29  }
 0x2e0 PF: > { %p655_p1 = scmp.ge.s32.totalorder %s762_s24, 2  ;;  %s503_s18 = sand.u32 1, %s750_s21  }
 0x2e1   : > { %s504_s20 = scalar_lea.sflag [#allocation3], %s503_s18 }
 0x2e2   : > { %p652_p2 = pnand %p655_p1, %p853_p6 }
 0x2e4   : > { %745 = dma.done.wait (!%p652_p2), %s504_s20, 128  }
 0x2e5   : > { %747 = vsyncadd (!%p652_p2), %s504_s20, 4294967168  ;;  %p16_p3 = scmp.ge.s32.totalorder %s836_s27, 4   ;;  %s992_s21 = smov %s754_s22 }
 0x2e6   : > { %s993_s22 = smov %s758_s23  ;;  %s994_s23 = smov %s847_s30 }
 0x2e7   : > { %s995_s24 = smov %s836_s27  ;;  %18 = sbr.rel (!%p16_p3) target bundleno = 3 (0x3), region = 79 }
 0x2ee   :  { %509 = vsyncpa [#allocation3], 1 }
 0x2ef   :  { %511 = vsyncpa [#allocation3 + $0x1], 1 }

</bundles_post_ra>
